<compile_context>
chip_gen: v7x
topology: tpu7x:2x2x1
jax: 0.10.0
libtpu: 0.0.40
codegen_flags: <defaults>
</compile_context>

<pallas_src>
import functools

import jax
import jax.numpy as jnp
from jax.experimental import pallas as pl
from jax.experimental.pallas import tpu as pltpu


def _band_weights(w_hwio, scale, W):
    """Fold BN scale into conv weights and build the per-ky block-banded
    (W*Cin, W*Cout) matrices that implement the 3-wide W-tap + channel mixing.

    w_hwio: (3, 3, Cin, Cout); scale: (Cout,).  Returns (3, W*Cin, W*Cout) bf16.
    band[ky, wi*C+ci, wo*C+co] = w[ky, wi-wo+1, ci, co] * scale[co]
                                 if 0 <= wi-wo+1 <= 2 else 0.
    """
    C = w_hwio.shape[2]
    w_s = w_hwio * scale[None, None, None, :]
    wi = jnp.arange(W)[:, None]
    wo = jnp.arange(W)[None, :]
    kx = wi - wo + 1                              # input col = out col + (kx-1)
    valid = (kx >= 0) & (kx <= 2)
    blocks = w_s[:, jnp.clip(kx, 0, 2)]           # (3, W, W, C, C)
    blocks = jnp.where(valid[None, :, :, None, None], blocks, 0.0)
    band = blocks.transpose(0, 1, 3, 2, 4).reshape(3, W * C, W * C)
    return band.astype(jnp.bfloat16)


def _rcu_kernel(x_ref, w1_ref, w2_ref, b1_ref, b2_ref, out_ref, xs_ref,
                *, H, WC):
    """One image per grid step (grid axis = batch).

    x_ref   : (1, H, WC)       folded input (W*C in lanes)
    w1_ref  : (3, WC, WC) bf16 conv1 band weights, BN1 scale folded
    w2_ref  : (3, WC, WC) bf16 conv2 band weights, BN2 scale folded
    b1_ref  : (1, WC) f32      BN1 shift (tiled along W)
    b2_ref  : (1, WC) f32      BN2 shift (tiled along W)
    out_ref : (1, H, WC)
    xs_ref  : (H+4, WC) bf16   persistent zero-bordered input slab
    """
    f32 = jnp.float32
    bf16 = jnp.bfloat16

    x = x_ref[0]                                   # (H, WC), input dtype

    # Zero-bordered bf16 slab: rows [2, H+2) hold the image; the 2 zero rows
    # on each side supply SAME padding along H.  Border rows are re-zeroed
    # EVERY grid step so the persistent scratch stays valid under megacore
    # (do not hoist behind program_id == 0).  Single bf16 cast of the image.
    xs_ref[0:2, :] = jnp.zeros((2, WC), bf16)
    xs_ref[H + 2:H + 4, :] = jnp.zeros((2, WC), bf16)
    xs_ref[2:H + 2, :] = x.astype(bf16)
    xs = xs_ref[...]                               # (H+4, WC) bf16

    w1 = w1_ref[...]                               # (3, WC, WC) bf16
    w2 = w2_ref[...]

    # ---- Conv1 (BN1 scale folded).  t[j] = sum_ky xs[j+ky] @ w1[ky] over
    # j in [0, H+2); j=0 / j=H+1 are masked below and become the zero padding
    # of the intermediate for conv2.  Accumulator starts from the first tap.
    M1 = H + 2
    acc1 = jnp.dot(xs[0:M1], w1[0], preferred_element_type=f32)
    acc1 = acc1 + jnp.dot(xs[1:M1 + 1], w1[1], preferred_element_type=f32)
    acc1 = acc1 + jnp.dot(xs[2:M1 + 2], w1[2], preferred_element_type=f32)

    # BN1 shift + ReLU + border-row mask, single cast to bf16 for conv2.
    row = jax.lax.broadcasted_iota(jnp.int32, (M1, 1), 0)
    interior = (row >= 1) & (row <= H)
    t = jnp.where(interior, jnp.maximum(acc1 + b1_ref[...], 0.0),
                  0.0).astype(bf16)                # (H+2, WC) bf16

    # ---- Conv2 (BN2 scale folded) over the H output rows.
    acc2 = jnp.dot(t[0:H], w2[0], preferred_element_type=f32)
    acc2 = acc2 + jnp.dot(t[1:H + 1], w2[1], preferred_element_type=f32)
    acc2 = acc2 + jnp.dot(t[2:H + 2], w2[2], preferred_element_type=f32)

    # ---- BN2 shift + residual (f32-exact from x_ref) + ReLU; lane-dense store.
    y = acc2 + b2_ref[...]
    out_ref[0] = jnp.maximum(x.astype(f32) + y, 0.0).astype(out_ref.dtype)


def rcu_forward(x_nhwc, w1, w2, scale1, shift1, scale2, shift2):
    """x_nhwc: (N, H, W, C). Conv weights HWIO (3,3,C,C). BN folded to scale/shift (C,)."""
    N, H, W, C = x_nhwc.shape
    WC = W * C

    w1b = _band_weights(w1, scale1, W)             # (3, WC, WC) bf16
    w2b = _band_weights(w2, scale2, W)
    b1 = jnp.tile(shift1, W).reshape(1, WC).astype(jnp.float32)
    b2 = jnp.tile(shift2, W).reshape(1, WC).astype(jnp.float32)

    # Free, contiguous reshape to the folded lane-dense layout.
    x2 = x_nhwc.reshape(N, H, WC)

    kernel = functools.partial(_rcu_kernel, H=H, WC=WC)

    out2 = pl.pallas_call(
        kernel,
        out_shape=jax.ShapeDtypeStruct((N, H, WC), x_nhwc.dtype),
        grid_spec=pltpu.PrefetchScalarGridSpec(
            num_scalar_prefetch=0,
            grid=(N,),
            in_specs=[
                pl.BlockSpec((1, H, WC), lambda n: (n, 0, 0)),
                pl.BlockSpec((3, WC, WC), lambda n: (0, 0, 0)),
                pl.BlockSpec((3, WC, WC), lambda n: (0, 0, 0)),
                pl.BlockSpec((1, WC), lambda n: (0, 0)),
                pl.BlockSpec((1, WC), lambda n: (0, 0)),
            ],
            out_specs=pl.BlockSpec((1, H, WC), lambda n: (n, 0, 0)),
            scratch_shapes=[pltpu.VMEM((H + 4, WC), jnp.bfloat16)],
        ),
        compiler_params=pltpu.CompilerParams(
            dimension_semantics=("parallel",),
            # Explicit scoped-VMEM limit: safe on all generations at this
            # size; raise (v5e/v6e) or add the H-tile halo grid (v7x) for
            # production image/channel sizes -- see TODOs above.
            vmem_limit_bytes=32 * 1024 * 1024),
    )(x2, w1b, w2b, b1, b2)

    return out2.reshape(N, H, W, C)


def rcu_reference(x_nhwc, w1, w2, scale1, shift1, scale2, shift2):
    dn = ("NHWC", "HWIO", "NHWC")
    hi = jax.lax.Precision.HIGHEST
    y = jax.lax.conv_general_dilated(x_nhwc, w1, (1, 1), "SAME",
                                     dimension_numbers=dn, precision=hi)
    y = y * scale1 + shift1
    y = jnp.maximum(y, 0.0)
    y = jax.lax.conv_general_dilated(y, w2, (1, 1), "SAME",
                                     dimension_numbers=dn, precision=hi)
    y = y * scale2 + shift2
    return jnp.maximum(x_nhwc + y, 0.0)


if __name__ == "__main__":
    N, C, H, W = 2, 4, 16, 16
    key = jax.random.PRNGKey(0)
    kx, kw1, kw2, kg1, kb1, km1, kv1, kg2, kb2, km2, kv2 = jax.random.split(key, 11)

    # Input (conceptually NCHW like PyTorch) -> kernel layout NHWC.
    x_nchw = jax.random.normal(kx, (N, C, H, W), jnp.float32)
    x_nhwc = jnp.transpose(x_nchw, (0, 2, 3, 1))

    # Conv weights: PyTorch layout (Cout, Cin, kh, kw) -> HWIO.
    w1_oihw = 0.1 * jax.random.normal(kw1, (C, C, 3, 3), jnp.float32)
    w2_oihw = 0.1 * jax.random.normal(kw2, (C, C, 3, 3), jnp.float32)
    w1 = jnp.transpose(w1_oihw, (2, 3, 1, 0))   # (kh, kw, Cin, Cout)
    w2 = jnp.transpose(w2_oihw, (2, 3, 1, 0))

    # BatchNorm (eval mode): fold gamma/beta/running stats into scale & shift.
    eps = 1e-5
    gamma1 = 1.0 + 0.1 * jax.random.normal(kg1, (C,), jnp.float32)
    beta1 = 0.1 * jax.random.normal(kb1, (C,), jnp.float32)
    mean1 = 0.1 * jax.random.normal(km1, (C,), jnp.float32)
    var1 = 1.0 + 0.1 * jax.random.uniform(kv1, (C,), jnp.float32)
    gamma2 = 1.0 + 0.1 * jax.random.normal(kg2, (C,), jnp.float32)
    beta2 = 0.1 * jax.random.normal(kb2, (C,), jnp.float32)
    mean2 = 0.1 * jax.random.normal(km2, (C,), jnp.float32)
    var2 = 1.0 + 0.1 * jax.random.uniform(kv2, (C,), jnp.float32)

    scale1 = gamma1 / jnp.sqrt(var1 + eps)
    shift1 = beta1 - mean1 * scale1
    scale2 = gamma2 / jnp.sqrt(var2 + eps)
    shift2 = beta2 - mean2 * scale2

    out = rcu_forward(x_nhwc, w1, w2, scale1, shift1, scale2, shift2)
    out = jax.block_until_ready(out)

    ref = rcu_reference(x_nhwc, w1, w2, scale1, shift1, scale2, shift2)
    assert out.shape == (N, H, W, C)
    # MXU operands are bf16 (f32 accumulation), so allow ~1e-2-scale deviation
    # vs the pure-f32 reference.
    max_err = float(jnp.max(jnp.abs(out - ref)))
    assert jnp.allclose(out, ref, atol=5e-2, rtol=5e-2), \
        f"mismatch vs reference, max abs err = {max_err}"

    print("KERNEL_OK")
</pallas_src>

<mosaic_0001>
module attributes {stable_mosaic.version = 11 : i64} {
  func.func @_rcu_kernel(%arg0: i32, %arg1: memref<1x16x64xf32, #tpu.memory_space<vmem>>, %arg2: memref<3x64x64xbf16, #tpu.memory_space<vmem>>, %arg3: memref<3x64x64xbf16, #tpu.memory_space<vmem>>, %arg4: memref<1x64xf32, #tpu.memory_space<vmem>>, %arg5: memref<1x64xf32, #tpu.memory_space<vmem>>, %arg6: memref<1x16x64xf32, #tpu.memory_space<vmem>>, %arg7: memref<20x64xbf16, #tpu.memory_space<vmem>>) attributes {dimension_semantics = [#tpu.dimension_semantics<parallel>], iteration_bounds = array<i64: 2>, scalar_prefetch = 0 : i64, scratch_operands = 1 : i64, tpu.core_type = #tpu.core_type<tc>, window_params = [{transform_indices = @transform_0, window_bounds = array<i64: 1, 16, 64>}, {pipeline_mode = #tpu.pipeline_mode<synchronous>, transform_indices = @transform_1, window_bounds = array<i64: 3, 64, 64>}, {pipeline_mode = #tpu.pipeline_mode<synchronous>, transform_indices = @transform_2, window_bounds = array<i64: 3, 64, 64>}, {pipeline_mode = #tpu.pipeline_mode<synchronous>, transform_indices = @transform_3, window_bounds = array<i64: 1, 64>}, {pipeline_mode = #tpu.pipeline_mode<synchronous>, transform_indices = @transform_4, window_bounds = array<i64: 1, 64>}, {transform_indices = @transform_5, window_bounds = array<i64: 1, 16, 64>}]} {
    %c0 = arith.constant 0 : index
    %c0_0 = arith.constant 0 : index
    %c0_1 = arith.constant 0 : index
    %0 = vector.load %arg1[%c0, %c0_0, %c0_1] : memref<1x16x64xf32, #tpu.memory_space<vmem>>, vector<1x16x64xf32>
    %1 = vector.shape_cast %0 : vector<1x16x64xf32> to vector<16x64xf32>
    %cst = arith.constant 0.000000e+00 : bf16
    %2 = vector.broadcast %cst : bf16 to vector<2x64xbf16>
    %c0_2 = arith.constant 0 : index
    %c0_3 = arith.constant 0 : index
    %3 = vector.load %arg7[%c0_2, %c0_3] : memref<20x64xbf16, #tpu.memory_space<vmem>>, vector<2x64xbf16>
    tpu.vector_store %arg7[%c0_2, %c0_3], %2 {strides = array<i32>} : memref<20x64xbf16, #tpu.memory_space<vmem>>, vector<2x64xbf16>,
    %cst_4 = arith.constant 0.000000e+00 : bf16
    %4 = vector.broadcast %cst_4 : bf16 to vector<2x64xbf16>
    %c18 = arith.constant 18 : index
    %c0_5 = arith.constant 0 : index
    %5 = vector.load %arg7[%c18, %c0_5] : memref<20x64xbf16, #tpu.memory_space<vmem>>, vector<2x64xbf16>
    tpu.vector_store %arg7[%c18, %c0_5], %4 {strides = array<i32>} : memref<20x64xbf16, #tpu.memory_space<vmem>>, vector<2x64xbf16>,
    %6 = arith.truncf %1 : vector<16x64xf32> to vector<16x64xbf16>
    %c2 = arith.constant 2 : index
    %c0_6 = arith.constant 0 : index
    %7 = vector.load %arg7[%c2, %c0_6] : memref<20x64xbf16, #tpu.memory_space<vmem>>, vector<16x64xbf16>
    tpu.vector_store %arg7[%c2, %c0_6], %6 {strides = array<i32>} : memref<20x64xbf16, #tpu.memory_space<vmem>>, vector<16x64xbf16>,
    %c0_7 = arith.constant 0 : index
    %c0_8 = arith.constant 0 : index
    %8 = vector.load %arg7[%c0_7, %c0_8] : memref<20x64xbf16, #tpu.memory_space<vmem>>, vector<20x64xbf16>
    %c0_9 = arith.constant 0 : index
    %c0_10 = arith.constant 0 : index
    %c0_11 = arith.constant 0 : index
    %9 = vector.load %arg2[%c0_9, %c0_10, %c0_11] : memref<3x64x64xbf16, #tpu.memory_space<vmem>>, vector<3x64x64xbf16>
    %c0_12 = arith.constant 0 : index
    %c0_13 = arith.constant 0 : index
    %c0_14 = arith.constant 0 : index
    %10 = vector.load %arg3[%c0_12, %c0_13, %c0_14] : memref<3x64x64xbf16, #tpu.memory_space<vmem>>, vector<3x64x64xbf16>
    %11 = vector.extract_strided_slice %8 {offsets = [0, 0], sizes = [18, 64], strides = [1, 1]} : vector<20x64xbf16> to vector<18x64xbf16>
    %12 = vector.extract_strided_slice %9 {offsets = [0, 0, 0], sizes = [1, 64, 64], strides = [1, 1, 1]} : vector<3x64x64xbf16> to vector<1x64x64xbf16>
    %13 = vector.shape_cast %12 : vector<1x64x64xbf16> to vector<64x64xbf16>
    %cst_15 = arith.constant dense<0.000000e+00> : vector<18x64xf32>
    %14 = tpu.matmul %11, %13, %cst_15 {dimension_numbers = #tpu.dot_dimension_numbers<[1], [0], [0], [1], [0, 0, 1, 1], [], []>} : vector<18x64xbf16>, vector<64x64xbf16>, vector<18x64xf32> -> vector<18x64xf32>
    %15 = vector.extract_strided_slice %8 {offsets = [1, 0], sizes = [18, 64], strides = [1, 1]} : vector<20x64xbf16> to vector<18x64xbf16>
    %16 = vector.extract_strided_slice %9 {offsets = [1, 0, 0], sizes = [1, 64, 64], strides = [1, 1, 1]} : vector<3x64x64xbf16> to vector<1x64x64xbf16>
    %17 = vector.shape_cast %16 : vector<1x64x64xbf16> to vector<64x64xbf16>
    %cst_16 = arith.constant dense<0.000000e+00> : vector<18x64xf32>
    %18 = tpu.matmul %15, %17, %cst_16 {dimension_numbers = #tpu.dot_dimension_numbers<[1], [0], [0], [1], [0, 0, 1, 1], [], []>} : vector<18x64xbf16>, vector<64x64xbf16>, vector<18x64xf32> -> vector<18x64xf32>
    %19 = arith.addf %14, %18 : vector<18x64xf32>
    %20 = vector.extract_strided_slice %8 {offsets = [2, 0], sizes = [18, 64], strides = [1, 1]} : vector<20x64xbf16> to vector<18x64xbf16>
    %21 = vector.extract_strided_slice %9 {offsets = [2, 0, 0], sizes = [1, 64, 64], strides = [1, 1, 1]} : vector<3x64x64xbf16> to vector<1x64x64xbf16>
    %22 = vector.shape_cast %21 : vector<1x64x64xbf16> to vector<64x64xbf16>
    %cst_17 = arith.constant dense<0.000000e+00> : vector<18x64xf32>
    %23 = tpu.matmul %20, %22, %cst_17 {dimension_numbers = #tpu.dot_dimension_numbers<[1], [0], [0], [1], [0, 0, 1, 1], [], []>} : vector<18x64xbf16>, vector<64x64xbf16>, vector<18x64xf32> -> vector<18x64xf32>
    %24 = arith.addf %19, %23 : vector<18x64xf32>
    %25 = tpu.iota {dimensions = array<i32: 0>} : vector<18x1xi32>
    %c1_i32 = arith.constant 1 : i32
    %26 = vector.broadcast %c1_i32 : i32 to vector<18x1xi32>
    %27 = arith.cmpi sge, %25, %26 : vector<18x1xi32>
    %c16_i32 = arith.constant 16 : i32
    %28 = vector.broadcast %c16_i32 : i32 to vector<18x1xi32>
    %29 = arith.cmpi sle, %25, %28 : vector<18x1xi32>
    %30 = arith.andi %27, %29 : vector<18x1xi1>
    %c0_18 = arith.constant 0 : index
    %c0_19 = arith.constant 0 : index
    %31 = vector.load %arg4[%c0_18, %c0_19] : memref<1x64xf32, #tpu.memory_space<vmem>>, vector<1x64xf32>
    %32 = vector.broadcast %31 : vector<1x64xf32> to vector<18x64xf32>
    %33 = arith.addf %24, %32 : vector<18x64xf32>
    %cst_20 = arith.constant 0.000000e+00 : f32
    %34 = vector.broadcast %cst_20 : f32 to vector<18x64xf32>
    %35 = arith.maximumf %33, %34 : vector<18x64xf32>
    %cst_21 = arith.constant 0.000000e+00 : f32
    %36 = vector.shape_cast %30 : vector<18x1xi1> to vector<18x1xi1>
    %37 = vector.broadcast %36 : vector<18x1xi1> to vector<18x64xi1>
    %38 = vector.broadcast %cst_21 : f32 to vector<18x64xf32>
    %39 = arith.select %37, %35, %38 : vector<18x64xi1>, vector<18x64xf32>
    %40 = arith.truncf %39 : vector<18x64xf32> to vector<18x64xbf16>
    %41 = vector.extract_strided_slice %40 {offsets = [0, 0], sizes = [16, 64], strides = [1, 1]} : vector<18x64xbf16> to vector<16x64xbf16>
    %42 = vector.extract_strided_slice %10 {offsets = [0, 0, 0], sizes = [1, 64, 64], strides = [1, 1, 1]} : vector<3x64x64xbf16> to vector<1x64x64xbf16>
    %43 = vector.shape_cast %42 : vector<1x64x64xbf16> to vector<64x64xbf16>
    %cst_22 = arith.constant dense<0.000000e+00> : vector<16x64xf32>
    %44 = tpu.matmul %41, %43, %cst_22 {dimension_numbers = #tpu.dot_dimension_numbers<[1], [0], [0], [1], [0, 0, 1, 1], [], []>} : vector<16x64xbf16>, vector<64x64xbf16>, vector<16x64xf32> -> vector<16x64xf32>
    %45 = vector.extract_strided_slice %40 {offsets = [1, 0], sizes = [16, 64], strides = [1, 1]} : vector<18x64xbf16> to vector<16x64xbf16>
    %46 = vector.extract_strided_slice %10 {offsets = [1, 0, 0], sizes = [1, 64, 64], strides = [1, 1, 1]} : vector<3x64x64xbf16> to vector<1x64x64xbf16>
    %47 = vector.shape_cast %46 : vector<1x64x64xbf16> to vector<64x64xbf16>
    %cst_23 = arith.constant dense<0.000000e+00> : vector<16x64xf32>
    %48 = tpu.matmul %45, %47, %cst_23 {dimension_numbers = #tpu.dot_dimension_numbers<[1], [0], [0], [1], [0, 0, 1, 1], [], []>} : vector<16x64xbf16>, vector<64x64xbf16>, vector<16x64xf32> -> vector<16x64xf32>
    %49 = arith.addf %44, %48 : vector<16x64xf32>
    %50 = vector.extract_strided_slice %40 {offsets = [2, 0], sizes = [16, 64], strides = [1, 1]} : vector<18x64xbf16> to vector<16x64xbf16>
    %51 = vector.extract_strided_slice %10 {offsets = [2, 0, 0], sizes = [1, 64, 64], strides = [1, 1, 1]} : vector<3x64x64xbf16> to vector<1x64x64xbf16>
    %52 = vector.shape_cast %51 : vector<1x64x64xbf16> to vector<64x64xbf16>
    %cst_24 = arith.constant dense<0.000000e+00> : vector<16x64xf32>
    %53 = tpu.matmul %50, %52, %cst_24 {dimension_numbers = #tpu.dot_dimension_numbers<[1], [0], [0], [1], [0, 0, 1, 1], [], []>} : vector<16x64xbf16>, vector<64x64xbf16>, vector<16x64xf32> -> vector<16x64xf32>
    %54 = arith.addf %49, %53 : vector<16x64xf32>
    %c0_25 = arith.constant 0 : index
    %c0_26 = arith.constant 0 : index
    %55 = vector.load %arg5[%c0_25, %c0_26] : memref<1x64xf32, #tpu.memory_space<vmem>>, vector<1x64xf32>
    %56 = vector.broadcast %55 : vector<1x64xf32> to vector<16x64xf32>
    %57 = arith.addf %54, %56 : vector<16x64xf32>
    %58 = arith.addf %1, %57 : vector<16x64xf32>
    %cst_27 = arith.constant 0.000000e+00 : f32
    %59 = vector.broadcast %cst_27 : f32 to vector<16x64xf32>
    %60 = arith.maximumf %58, %59 : vector<16x64xf32>
    %c0_28 = arith.constant 0 : index
    %c0_29 = arith.constant 0 : index
    %c0_30 = arith.constant 0 : index
    %61 = vector.load %arg6[%c0_28, %c0_29, %c0_30] : memref<1x16x64xf32, #tpu.memory_space<vmem>>, vector<1x16x64xf32>
    %62 = vector.shape_cast %61 : vector<1x16x64xf32> to vector<16x64xf32>
    %63 = vector.shape_cast %60 : vector<16x64xf32> to vector<1x16x64xf32>
    tpu.vector_store %arg6[%c0_28, %c0_29, %c0_30], %63 {strides = array<i32>} : memref<1x16x64xf32, #tpu.memory_space<vmem>>, vector<1x16x64xf32>,
    return
  }
  func.func @transform_0(%arg0: i32) -> (i32, i32, i32) {
    %c0_i32 = arith.constant 0 : i32
    %c0_i32_0 = arith.constant 0 : i32
    %c0_i32_1 = arith.constant 0 : i32
    return %arg0, %c0_i32, %c0_i32_0 : i32, i32, i32
  }
  func.func @transform_1(%arg0: i32) -> (i32, i32, i32) {
    %c0_i32 = arith.constant 0 : i32
    %c0_i32_0 = arith.constant 0 : i32
    %c0_i32_1 = arith.constant 0 : i32
    %c0_i32_2 = arith.constant 0 : i32
    return %c0_i32, %c0_i32_0, %c0_i32_1 : i32, i32, i32
  }
  func.func @transform_2(%arg0: i32) -> (i32, i32, i32) {
    %c0_i32 = arith.constant 0 : i32
    %c0_i32_0 = arith.constant 0 : i32
    %c0_i32_1 = arith.constant 0 : i32
    %c0_i32_2 = arith.constant 0 : i32
    return %c0_i32, %c0_i32_0, %c0_i32_1 : i32, i32, i32
  }
  func.func @transform_3(%arg0: i32) -> (i32, i32) {
    %c0_i32 = arith.constant 0 : i32
    %c0_i32_0 = arith.constant 0 : i32
    %c0_i32_1 = arith.constant 0 : i32
    return %c0_i32, %c0_i32_0 : i32, i32
  }
  func.func @transform_4(%arg0: i32) -> (i32, i32) {
    %c0_i32 = arith.constant 0 : i32
    %c0_i32_0 = arith.constant 0 : i32
    %c0_i32_1 = arith.constant 0 : i32
    return %c0_i32, %c0_i32_0 : i32, i32
  }
  func.func @transform_5(%arg0: i32) -> (i32, i32, i32) {
    %c0_i32 = arith.constant 0 : i32
    %c0_i32_0 = arith.constant 0 : i32
    %c0_i32_1 = arith.constant 0 : i32
    return %arg0, %c0_i32, %c0_i32_0 : i32, i32, i32
  }
}

</mosaic_0001>

<bundles_post_ra>
// kernel: tpu_custom_call.1
= control target key start
LH: loop header
LB: loop body
LE: loop exit
PB: predicated region body
PF: predicated region fallthrough
CT: control target
= control target key end

     0   :  { %10 = vsyncpa [#allocation4], 0  ;;  %s1754_s0 = inlined_call_operand.hbm [shape: f32[2,16,64], index: 0, kind: input, shape index: {}]   ;;  %s1755_s1 = inlined_call_operand.hbm [shape: bf16[3,64,64], index: 1, kind: input, shape index: {}]   ;;  %s1756_s2 = inlined_call_operand.hbm [shape: bf16[3,64,64], index: 2, kind: input, shape index: {}]   ;;  %s1757_s3 = inlined_call_operand.vmem [shape: f32[1,64], index: 3, kind: input, shape index: {}]   ;;  %s1758_s4 = inlined_call_operand.vmem [shape: f32[1,64], index: 4, kind: input, shape index: {}]   ;;  %s1759_s5 = inlined_call_operand.hbm [shape: f32[2,16,64], index: 5, kind: output, shape index: {}]  }
   0x1   :  { %12 = vsyncpa [#allocation4 + $0x1], 0 }
   0x2   :  { %13 = vsyncpa [#allocation7], 0 }
   0x3   :  { %14 = vsyncpa [#allocation5], 0 }
   0x4   :  { %16 = vsyncpa [#allocation5 + $0x1], 0  ;;  %s1465_s18 = smov 0   ;;  %s1467_s19 = smov 0  }
   0x5   :  { %s1469_s20 = smov 0   ;;  %s1471_s21 = smov 0  }
   0x6 LB: > { %s1486_s22 = sadd.s32 4294967295, %s1420_s21   ;;  %s996_s23 = sadd.s32 4294967294, %s1420_s21   ;;  %s1420_s21 = sphi %s1471_s21, %s1779_s21   ;;  %s1416_s20 = sphi %s1469_s20, %s1778_s20   ;;  %s1412_s19 = sphi %s1467_s19, %s1777_s19   ;;  %s1408_s18 = sphi %s1465_s18, %s1776_s18  }
   0x7   : > { %p42_p0 = scmp.ne.s32.totalorder %s1412_s19, %s1408_s18  ;;  %p1760_p1 = scmp.eq.s32.totalorder %s1486_s22, 0 }
   0x8   : > { %p156_p3 = scmp.eq.s32.totalorder %s996_s23, 1  ;;  %p997_p5 = scmp.ge.s32.totalorder %s1420_s21, 1 }
   0x9   : > { %p1495_p4 = por %p1760_p1, %p42_p0  ;;  %p163_p7 = scmp.lt.s32.totalorder %s1420_s21, 3 }
   0xa   : > { %p1500_p6 = por %p156_p3, %p42_p0  ;;  %s1422_s27 = smov [#allocation6]  }
   0xb   : > { %s1763_s24 = scalar_select %p1495_p4, 1, 0 }
   0xc   : > { %s1764_s25 = scalar_select %p1500_p6, 1, 0 }
   0xd   : > { %p1505_p8 = pnand %p997_p5, %p163_p7  ;;  %s175_s28 = sshll.u32 %s1422_s27, 4  ;;  %s1509_s28 = int_to_ptr.vmem [resolvable:$true] %s175_s28 }
   0xe   : > { %s1423_s30 = smov [#allocation8]   ;;  %s1264_s9 = scalar_lea.hbm %s1755_s1, 1536 }
   0xf   : > { %p1174_p9 = pneg %p1505_p8  ;;  %s188_s6 = sshll.u32 %s1423_s30, 4  ;;  %s1520_s6 = int_to_ptr.vmem [resolvable:$true] %s188_s6 }
  0x10   : > { %p1265_p12 = scmp.ne.s32.totalorder %s1755_s1, %s1264_s9  ;;  %p1271_p5 = scmp.lt.u32.totalorder %s1264_s9, %s1755_s1 }
  0x11   : > { %p1516_p11 = pnand %p1174_p9, %p1760_p1 }
  0x13   : > { %p1266_p13 = pneg %p1516_p11 }
  0x15   : > { %p1267_p0 = pnand %p1266_p13, %p1265_p12 }
  0x17   : > { %p1268_p3 = pneg %p1267_p0 }
  0x19   : > { %p1273_p7 = pnand %p1271_p5, %p1268_p3 }
  0x1b   : > { %1276 = shalt.err (!%p1273_p7)
}
  0x1c   : > { %s1277_s14 = scalar_lea.vmem %s1509_s28, 1536  ;;  %p1285_p2 = scmp.lt.s32.totalorder %s1509_s28, %s1509_s28 }
  0x1d   : > { %p1278_p9 = scmp.ne.s32.totalorder %s1509_s28, %s1277_s14  ;;  %p1286_p12 = scmp.lt.s32.totalorder %s1277_s14, %s1277_s14 }
  0x1f   : > { %p1280_p10 = pnand %p1278_p9, %p1266_p13  ;;  %p1287_p0 = por %p1286_p12, %p1285_p2 }
  0x21   : > { %p1281_p1 = pneg %p1280_p10 }
  0x23   : > { %p1288_p6 = pnand %p1287_p0, %p1281_p1 }
  0x25   : > { %1291 = shalt.err (!%p1288_p6)
}
  0x26   : > { %s1424_s15 = smov 64   ;;  %s1425_s16 = smov 4  }
  0x27   : > { %1177 = dma.hbm_to_vmem [thread:$0]  (!%p1516_p11), %s1755_s1, 1536, %s1509_s28, [#allocation7], %s1424_s15, %s1424_s15, %s1425_s16  }
  0x28   : > { %s1292_s7 = scalar_lea.hbm %s1756_s2, 1536 }
  0x29   : > { %p1293_p2 = scmp.ne.s32.totalorder %s1756_s2, %s1292_s7  ;;  %p1299_p10 = scmp.lt.u32.totalorder %s1292_s7, %s1756_s2 }
  0x2b   : > { %p1295_p1 = pnand %p1293_p2, %p1266_p13 }
  0x2d   : > { %p1296_p6 = pneg %p1295_p1 }
  0x2f   : > { %p1301_p3 = pnand %p1299_p10, %p1296_p6 }
  0x31   : > { %1304 = shalt.err (!%p1301_p3)
}
  0x32   : > { %s1305_s28 = scalar_lea.vmem %s1520_s6, 1536  ;;  %p1313_p12 = scmp.lt.s32.totalorder %s1520_s6, %s1520_s6 }
  0x33   : > { %p1306_p5 = scmp.ne.s32.totalorder %s1520_s6, %s1305_s28  ;;  %p1314_p0 = scmp.lt.s32.totalorder %s1305_s28, %s1305_s28 }
  0x35   : > { %p1308_p7 = pnand %p1306_p5, %p1266_p13  ;;  %p1315_p2 = por %p1314_p0, %p1313_p12 }
  0x37   : > { %p1309_p9 = pneg %p1308_p7 }
  0x39   : > { %p1316_p1 = pnand %p1315_p2, %p1309_p9 }
  0x3b   : > { %1319 = shalt.err (!%p1316_p1)
}
  0x3c   : > { %1180 = dma.hbm_to_vmem [thread:$0]  (!%p1516_p11), %s1756_s2, 1536, %s1520_s6, [#allocation7], %s1424_s15, %s1424_s15, %s1425_s16  }
  0x3d   : > { %s1575_s14 = sadd.s32 1, %s1420_s21   ;;  %s29_s29 = sadd.s32 1, %s1416_s20 }
  0x3e   : > { %s26_s17 = ssub.s32 %s1420_s21, %s1575_s14  ;;  %p36_p13 = scmp.ne.s32.totalorder %s1416_s20, %s1412_s19 }
  0x3f   : > { %p27_p6 = scmp.eq.s32.totalorder %s26_s17, 0  ;;  %p37_p10 = scmp.eq.s32.totalorder %s1420_s21, 0 }
  0x40   : > { %p1767_p3 = scmp.eq.s32.totalorder %s1486_s22, 1  ;;  %p1191_p7 = scmp.lt.s32.totalorder %s1420_s21, 2 }
  0x41   : > { %s1591_s27 = scalar_select %p27_p6, %s1416_s20, %s29_s29  }
  0x42   : > { %p1585_p5 = por %p1767_p3, %p36_p13  ;;  %p38_p9 = por %p37_p10, %p36_p13 }
  0x43   : > { %s208_s30 = sand.u32 1, %s1416_s20   ;;  %s1053_s6 = sshll.u32 %s1420_s21, 8 }
  0x44   : > { %s1768_s23 = scalar_select %p1585_p5, 1, 0 }
  0x45   : > { %s1001_s7 = sshll.u32 %s208_s30, 4  ;;  %s1598_s8 = scalar_lea.hbm %s1754_s0, %s1053_s6 }
  0x46   : > { %s212_s9 = scalar_lea.vmem [#allocation3], %s1001_s7  ;;  %p1602_p11 = pnand %p1191_p7, %p38_p9 }
  0x47   : > { %s219_s10 = sshll.u32 %s212_s9, 4  ;;  %s1606_s28 = scalar_lea.sflag [#allocation4], %s208_s30  ;;  %s1600_s10 = int_to_ptr.vmem [resolvable:$true] %s219_s10 }
  0x48   : > { %s1320_s12 = scalar_lea.hbm %s1598_s8, 256  ;;  %p1322_p0 = pneg %p1602_p11 }
  0x49   : > { %p1321_p12 = scmp.ne.s32.totalorder %s1598_s8, %s1320_s12  ;;  %s1325_s17 = scalar_lea.hbm %s1754_s0, 512 }
  0x4a   : > { %p1326_p13 = scmp.lt.u32.totalorder %s1598_s8, %s1754_s0  ;;  %p1327_p6 = scmp.lt.u32.totalorder %s1325_s17, %s1320_s12 }
  0x4b   : > { %p1323_p2 = pnand %p1322_p0, %p1321_p12  ;;  %p1329_p3 = scmp.lt.u32.totalorder %s1320_s12, %s1598_s8 }
  0x4c   : > { %p1328_p10 = por %p1327_p6, %p1326_p13 }
  0x4d   : > { %p1324_p1 = pneg %p1323_p2 }
  0x4e   : > { %p1330_p7 = por %p1329_p3, %p1328_p10 }
  0x50   : > { %p1331_p9 = pnand %p1330_p7, %p1324_p1 }
  0x52   : > { %1334 = shalt.err (!%p1331_p9)
}
  0x53   : > { %s1335_s30 = scalar_lea.vmem %s1600_s10, 256  ;;  %s1426_s15 = smov [#allocation3]  }
  0x54   : > { %p1336_p12 = scmp.ne.s32.totalorder %s1600_s10, %s1335_s30  ;;  %s1340_s16 = sshll.u32 %s1426_s15, 4  ;;  %s1341_s16 = int_to_ptr.vmem [resolvable:$false] %s1340_s16 }
  0x55   : > { %s1342_s9 = scalar_lea.vmem %s1341_s16, 512  ;;  %p1343_p4 = scmp.lt.s32.totalorder %s1600_s10, %s1341_s16 }
  0x56   : > { %p1338_p2 = pnand %p1336_p12, %p1322_p0  ;;  %p1344_p13 = scmp.lt.s32.totalorder %s1342_s9, %s1335_s30 }
  0x58   : > { %p1339_p5 = pneg %p1338_p2  ;;  %p1345_p6 = por %p1344_p13, %p1343_p4 }
  0x5a   : > { %p1346_p10 = pnand %p1345_p6, %p1339_p5 }
  0x5c   : > { %1349 = shalt.err (!%p1346_p10)
}
  0x5d   : > { %s1427_s12 = smov 128   ;;  %s1428_s13 = smov 8  }
  0x5e   : > { %1184 = dma.hbm_to_vmem [thread:$0]  (!%p1602_p11), %s1598_s8, 256, %s1600_s10, %s1606_s28, %s1427_s12, %s1427_s12, %s1428_s13  }
  0x5f   : > { %231 = sbr.rel (%p1505_p8) target bundleno = 632 (0x278), region = 40  ;;  %s1637_s29 = sand.u32 (!%p1505_p8), 1, %s1412_s19  }
  0x60   : > { %s1005_s17 = sshll.u32 (!%p1505_p8), %s1637_s29, 4  ;;  %s234_s7 = scalar_lea.sflag (!%p1505_p8), [#allocation4], %s1637_s29 }
  0x61   : > { %s237_s6 = scalar_lea.vmem (!%p1505_p8), [#allocation3], %s1005_s17  ;;  %p1770_p4 = scmp.ne.s32.totalorder (!%p1505_p8), %s1763_s24, 0 }
  0x66   : > { %1395 = dma.done.wait (%p1770_p4), %s234_s7, 256  }
  0x67   : > { %1397 = vsyncadd (%p1770_p4), %s234_s7, 4294967040  ;;  %p1771_p5 = scmp.eq.s32.totalorder %s1486_s22, 0 }
  0x69   : > { %1399 = dma.done.wait (%p1771_p5), [#allocation7], 3072   ;;  %p1772_p8 = pmov %p1771_p5 }
  0x6a   : > { %vm275_vm0 = vcmask 516096   ;;  %v1429_v0 = vmov 0   ;;  %v1238_v1 = vld [vmem:[#allocation6 + $0x20] sm:$0xff]   ;;  %v1240_v3 = vld [vmem:[#allocation6 + $0x28] sm:$0xff]   ;;  %v1242_v5 = vld [vmem:[#allocation6 + $0x30] sm:$0xff]   ;;  %vm285_vm1 = vcmask 1040384   ;;  %v616_v56 = vlaneseq }
  0x6b   : > { %1401 = vsyncadd (%p1772_p8), [#allocation7], 4294964224  ;;  %276 = vst.msk [vmem:[#allocation2] sm:$0x1] %vm275_vm0, %v1429_v0  ;;  %v1239_v2 = vld [vmem:[#allocation6] sm:$0xff]   ;;  %1090 = vmatprep.subr.bf16.mxu0 %v1238_v1  ;;  %v1241_v4 = vld [vmem:[#allocation6 + $0x8] sm:$0xff]  }
  0x6c   : > { %1091 = vmatpush3.bf16.msra.mxu0 %v1238_v1  ;;  %1102 = vmatprep.subr.bf16.mxu1 %v1239_v2  ;;  %v1243_v6 = vld [vmem:[#allocation6 + $0x10] sm:$0xff]   ;;  %v1244_v7 = vld [vmem:[#allocation6 + $0x38] sm:$0xff]   ;;  %vm286_vm2 = vcmask 1044484   ;;  %vm296_vm3 = vcmask 519169   ;;  %vm298_vm5 = vcmask 519168   ;;  %v1248_v15 = vld [vmem:[#allocation6 + $0x40] sm:$0xff]  }
  0x6d   : > { %1103 = vmatpush3.bf16.msra.mxu1 %v1239_v2  ;;  %1092 = vmatprep.subr.bf16.mxu0 %v1240_v3  ;;  %v1652_v8 = vld [vmem:[%s237_s6] sm:$0xff]  ;;  %v1654_v9 = vld [vmem:[%s237_s6 + $0x8] sm:$0xff]  ;;  %vm287_vm4 = vmor %vm285_vm1, %vm286_vm2  ;;  %vm400_vm6 = vcmask 523264   ;;  %vm360_vm7 = vsmask.f32 7424  ;;  %vm531_vm8 = vcmask 1046528  }
  0x6e   : > { %1104 = vmatprep.subr.bf16.mxu1 %v1241_v4  ;;  %v1245_v10 = vld [vmem:[#allocation6 + $0x18] sm:$0xff]   ;;  %v1054_v11 = vpack.c.bf16 %v1652_v8, %v1652_v8  ;;  %v1055_v12 = vpack.c.bf16 %v1654_v9, %v1654_v9  ;;  %v1249_v32 = vld [vmem:[#allocation6 + $0x48] sm:$0xff]   ;;  %v1250_v34 = vld [vmem:[#allocation6 + $0x50] sm:$0xff]   ;;  %v1430_v37 = vmov 0.0   ;;  %vm1431_vm9 = vmmov 0   ;;  %s1056_s11 = sshll.u32 %s1486_s22, 8 }
  0x6f   : > { %v1251_v35 = vld [vmem:[#allocation6 + $0x58] sm:$0xff]   ;;  %v1252_v36 = vld [vmem:[#allocation8] sm:$0xff]   ;;  %v1253_v38 = vld [vmem:[#allocation8 + $0x8] sm:$0xff]   ;;  %v617_v57 = vshrl.u32 %v616_v56, 7  ;;  %s271_s28 = scalar_lea.vmem [#allocation9], %s1005_s17  ;;  %s1706_s9 = scalar_lea.hbm %s1759_s5, %s1056_s11 }
  0x70   : > { %1093 = vmatpush3.bf16.msra.mxu0 %v1240_v3  ;;  %v288_v13 = vrot.slane %v1054_v11, 7  ;;  %v290_v14 = vrot.slane %v1055_v12, 7  ;;  %v1254_v39 = vld [vmem:[#allocation8 + $0x20] sm:$0xff]   ;;  %v1255_v40 = vld [vmem:[#allocation8 + $0x10] sm:$0xff]   ;;  %v1256_v41 = vld [vmem:[#allocation8 + $0x28] sm:$0xff]   ;;  %s904_s30 = sshll.u32 %s271_s28, 4  ;;  %s1708_s30 = int_to_ptr.vmem [resolvable:$true] %s904_s30 }
  0x71   : > { %1105 = vmatpush3.bf16.msra.mxu1 %v1241_v4  ;;  %1094 = vmatprep.subr.bf16.mxu0 %v1242_v5  ;;  %v1257_v42 = vld [vmem:[#allocation8 + $0x18] sm:$0xff]   ;;  %v1258_v43 = vld [vmem:[#allocation8 + $0x30] sm:$0xff]   ;;  %v619_v59 = vadd.s32 16, %v617_v57  ;;  %vm620_vm11 = vcmp.ge.s32.totalorder %v617_v57, 1  ;;  %s891_s22 = scalar_lea.sflag [#allocation5], %s1637_s29  ;;  %s1350_s12 = scalar_lea.vmem %s1708_s30, 256 }
  0x72   : > { %1106 = vmatprep.subr.bf16.mxu1 %v1243_v6  ;;  %v289_v16 = vrot.slane %v288_v13, 4  ;;  %v292_v17 = vrot.slane %v290_v14, 4  ;;  %297 = vst.msk [vmem:[#allocation2] sm:$0xe] %vm296_vm3, %v288_v13  ;;  %v1259_v44 = vld [vmem:[#allocation8 + $0x38] sm:$0xff]   ;;  %p1351_p11 = scmp.ne.s32.totalorder %s1708_s30, %s1350_s12  ;;  %p1773_p0 = scmp.ne.s32.totalorder %s1768_s23, 0 }
  0x73   : > { %v1031_v60 = vld [vmem:[%s1757_s3] ss:$0 sm:$0xff]  ;;  %vm625_vm10 = vcmp.le.s32.totalorder %v619_v59, 16  ;;  %s1432_s13 = smov [#allocation9]  }
  0x74   : > { %1095 = vmatpush3.bf16.msra.mxu0 %v1242_v5  ;;  %v291_v18 = vsel %vm287_vm4, %v289_v16, %v290_v14  ;;  %300 = vst.msk [vmem:[#allocation2 + $0x8] sm:$0x1] %vm275_vm0, %v292_v17  ;;  %p1352_p1 = pnand %p1351_p11, %p1773_p0  ;;  %s1354_s17 = sshll.u32 %s1432_s13, 4  ;;  %s1355_s17 = int_to_ptr.vmem [resolvable:$false] %s1354_s17 }
  0x75   : > { %1107 = vmatpush3.bf16.msra.mxu1 %v1243_v6  ;;  %1096 = vmatprep.subr.bf16.mxu0 %v1244_v7  ;;  %299 = vst.msk [vmem:[#allocation2 + $0x4] sm:$0xf] %vm298_vm5, %v291_v18  ;;  %s1356_s7 = scalar_lea.vmem %s1355_s17, 512  ;;  %p1357_p7 = scmp.lt.s32.totalorder %s1708_s30, %s1355_s17 }
  0x76   : > { %1108 = vmatprep.subr.bf16.mxu1 %v1245_v10  ;;  %p1353_p3 = pneg %p1352_p1  ;;  %p1358_p9 = scmp.lt.s32.totalorder %s1356_s7, %s1350_s12 }
  0x78   : > { %1097 = vmatpush3.bf16.msra.mxu0 %v1244_v7  ;;  %p1359_p12 = por %p1358_p9, %p1357_p7 }
  0x79   : > { %1109 = vmatpush3.bf16.msra.mxu1 %v1245_v10  ;;  %1114 = vmatprep.subr.bf16.mxu0 %v1248_v15 }
  0x7a   : > { %1126 = vmatprep.subr.bf16.mxu1 %v1430_v37  ;;  %p1360_p2 = pnand %p1359_p12, %p1353_p3 }
  0x7b   : > { %v1247_v19 = vld [vmem:[#allocation2 + $0x8] ss:$0 sps:$4 sm:$0x33]  }
  0x7c   : > { %v1246_v20 = vld [vmem:[#allocation2] sm:$0xff]   ;;  %v369_v21 = vshll.u32 %v1247_v19, 16  ;;  %v373_v24 = vshrl.u32 %v1247_v19, 16  ;;  %v533_v28 = vrot.slane %v1247_v19, 1 }
  0x7d   : > { %v362_v22 = vshrl.u32 %v1246_v20, 16  ;;  %v364_v23 = vshll.u32 %v1246_v20, 16  ;;  %1110 = vmatprep.mubr.msk.bf16.mxu1 %vm400_vm6, %v1246_v20  ;;  %v532_v27 = vrot.slane %v1246_v20, 1 }
  0x7e   : > { %v371_v25 = vrot.slane %v369_v21, 1  ;;  %1111 = vmatmul.mubr.msk.bf16.vlgmr.msra.gmra.mrb[0].mxu1 %vm400_vm6, %v1247_v19 }
  0x7f   : > { %v366_v26 = vrot.slane %v364_v23, 1  ;;  %v534_v33 = vsel %vm531_vm8, %v532_v27, %v533_v28  ;;  %1127 = vmatpush3.bf16.msra.mxu1 %v1254_v39  ;;  %1134 = vmatprep.mubr.msk.bf16.mxu1 %vm1431_vm9, %v1430_v37  ;;  %v1262_v27 = vld [vmem:[#allocation8 + $0x50] sm:$0xff]  }
  0x80   : > { %v375_v30 = vor.u32 %v373_v24, %v371_v25  ;;  %1128 = vmatprep.subr.bf16.mxu1 %v1430_v37  ;;  %v1260_v24 = vld [vmem:[#allocation8 + $0x40] sm:$0xff]  }
  0x81   : > { %v367_v29 = vor.u32 %v366_v26, %v362_v22  ;;  %v1261_v26 = vld [vmem:[#allocation8 + $0x48] sm:$0xff]  }
  0x83   : > { %v372_v31 = vsel %vm360_vm7, %v367_v29, %v371_v25  ;;  %1129 = vmatpush3.bf16.msra.mxu1 %v1256_v41 }
  0x84   : > { %1098 = vmatprep.mubr.msk.bf16.mxu0 %vm400_vm6, %v372_v31  ;;  %1130 = vmatprep.subr.bf16.mxu1 %v1430_v37 }
  0x85   : > { %1099 = vmatmul.mubr.msk.bf16.vlgmr.msra.gmra.mrb[0].mxu0 %vm400_vm6, %v375_v30 }
  0x86   : > { %1115 = vmatpush3.bf16.msra.mxu0 %v1248_v15  ;;  %1122 = vmatprep.mubr.msk.bf16.mxu0 %vm400_vm6, %v534_v33 }
  0x87   : > { %1116 = vmatprep.subr.bf16.mxu0 %v1249_v32  ;;  %1131 = vmatpush3.bf16.msra.mxu1 %v1258_v43 }
  0x88   : > { %1132 = vmatprep.subr.bf16.mxu1 %v1430_v37 }
  0x8a   : > { %1117 = vmatpush3.bf16.msra.mxu0 %v1249_v32 }
  0x8b   : > { %1118 = vmatprep.subr.bf16.mxu0 %v1250_v34  ;;  %1133 = vmatpush3.bf16.msra.mxu1 %v1259_v44 }
  0x8c   : > { %1150 = vmatprep.subr.bf16.mxu1 %v1430_v37 }
  0x8e   : > { %1119 = vmatpush3.bf16.msra.mxu0 %v1250_v34 }
  0x8f   : > { %1120 = vmatprep.subr.bf16.mxu0 %v1251_v35 }
  0x92   : > { %1121 = vmatpush3.bf16.msra.mxu0 %v1251_v35 }
  0x93   : > { %1138 = vmatprep.subr.bf16.mxu0 %v1430_v37 }
  0x95   : > { %1123 = vmatmul.mubr.msk.bf16.vlgmr.msra.gmra.mrb[4].mxu0 %vm400_vm6, %v533_v28  ;;  %v1263_v28 = vld [vmem:[#allocation8 + $0x58] sm:$0xff]  }
  0x96   : > { %1139 = vmatpush3.bf16.msra.mxu0 %v1252_v36  ;;  %1146 = vmatprep.mubr.msk.bf16.mxu0 %vm1431_vm9, %v1430_v37 }
  0x97   : > { %1140 = vmatprep.subr.bf16.mxu0 %v1430_v37 }
  0x9a   : > { %1141 = vmatpush3.bf16.msra.mxu0 %v1253_v38 }
  0x9b   : > { %1142 = vmatprep.subr.bf16.mxu0 %v1430_v37 }
  0x9e   : > { %1143 = vmatpush3.bf16.msra.mxu0 %v1255_v40 }
  0x9f   : > { %1144 = vmatprep.subr.bf16.mxu0 %v1430_v37 }
  0xa2   : > { %1145 = vmatpush3.bf16.msra.mxu0 %v1257_v42 }
 0x151   : > { %v1112_v45 = vpop.f32.mrb[0].mxu1 }
 0x152   : > { %v517_v46 = vpop.f32.mrb[1].mxu1 }
 0x153   : > { %v1113_v47 = vpop.f32.mrb[2].mxu1 }
 0x154   : > { %v520_v48 = vpop.f32.mrb[3].mxu1 }
 0x158   : > { %v1100_v49 = vpop.f32.mrb[0].mxu0 }
 0x159   : > { %v526_v50 = vadd.f32 %v1112_v45, %v1100_v49  ;;  %v441_v51 = vpop.f32.mrb[1].mxu0 }
 0x15a   : > { %v518_v52 = vadd.f32 %v517_v46, %v441_v51  ;;  %v1101_v53 = vpop.f32.mrb[2].mxu0 }
 0x15b   : > { %v444_v54 = vpop.f32.mrb[3].mxu0 }
 0x15c   : > { %v521_v55 = vadd.f32 %v520_v48, %v444_v54 }
 0x168   : > { %v1124_v58 = vpop.f32.mrb[4].mxu0 }
 0x169   : > { %v615_v61 = vadd.f32 %v1124_v58, %v526_v50  ;;  %v599_v62 = vpop.f32.mrb[5].mxu0 }
 0x16a   : > { %v613_v63 = vadd.f32 %v599_v62, %v518_v52  ;;  %v1125_v0 = vpop.f32.mrb[6].mxu0 }
 0x16b   : > { %v638_v1 = vadd.f32 %v1031_v60, %v615_v61  ;;  %v602_v2 = vpop.f32.mrb[7].mxu0 }
 0x16c   : > { %v636_v3 = vadd.f32 %v1031_v60, %v613_v63  ;;  %v614_v4 = vadd.f32 %v602_v2, %v521_v55 }
 0x16d   : > { %v641_v5 = vmax.f32 %v638_v1, 0.0 }
 0x16e   : > { %v639_v6 = vmax.f32 %v636_v3, 0.0  ;;  %v637_v7 = vadd.f32 %v1031_v60, %v614_v4 }
 0x16f   : > { %v650_v10 = vsel %vm625_vm10, %v641_v5, 0.0 }
 0x170   : > { %v652_v11 = vpack.c.bf16 %v650_v10, %v650_v10  ;;  %v648_v12 = vsel %vm620_vm11, %v639_v6, 0.0  ;;  %v640_v13 = vmax.f32 %v637_v7, 0.0 }
 0x172   : > { %v651_v14 = vpack.c.bf16 %v640_v13, %v648_v12  ;;  %v661_v15 = vshll.u32 %v652_v11, 16  ;;  %v803_v16 = vrot.slane %v652_v11, 1 }
 0x174   : > { %1147 = vmatmul.mubr.msk.bf16.vlgmr.msra.gmra.mrb[8].mxu0 %vm400_vm6, %v651_v14  ;;  %v656_v17 = vshll.u32 %v651_v14, 16  ;;  %v802_v18 = vrot.slane %v651_v14, 1  ;;  %v654_v19 = vshrl.u32 %v651_v14, 16  ;;  %v663_v22 = vrot.slane %v661_v15, 1 }
 0x176   : > { %v658_v20 = vrot.slane %v656_v17, 1  ;;  %v804_v21 = vsel %vm531_vm8, %v802_v18, %v803_v16 }
 0x178   : > { %v659_v23 = vor.u32 %v658_v20, %v654_v19 }
 0x17a   : > { %v664_v25 = vsel %vm360_vm7, %v659_v23, %v663_v22 }
 0x17b   : > { %1135 = vmatmul.mubr.msk.bf16.vlgmr.msra.gmra.mrb[4].mxu1 %vm400_vm6, %v664_v25 }
 0x17c   : > { %1151 = vmatpush3.bf16.msra.mxu1 %v1260_v24  ;;  %1158 = vmatprep.mubr.msk.bf16.mxu1 %vm1431_vm9, %v1430_v37 }
 0x17d   : > { %1152 = vmatprep.subr.bf16.mxu1 %v1430_v37 }
 0x180   : > { %1153 = vmatpush3.bf16.msra.mxu1 %v1261_v26 }
 0x181   : > { %1154 = vmatprep.subr.bf16.mxu1 %v1430_v37 }
 0x184   : > { %1155 = vmatpush3.bf16.msra.mxu1 %v1262_v27 }
 0x185   : > { %1156 = vmatprep.subr.bf16.mxu1 %v1430_v37  ;;  %v1047_v37 = vld [vmem:[%s1758_s4] ss:$0 sm:$0xff] }
 0x188   : > { %1157 = vmatpush3.bf16.msra.mxu1 %v1263_v28 }
 0x18b   : > { %1159 = vmatmul.mubr.msk.bf16.vlgmr.msra.gmra.mrb[8].mxu1 %vm400_vm6, %v804_v21 }
 0x247   : > { %v793_v29 = vpop.f32.mrb[8].mxu0 }
 0x248   : > { %v1148_v30 = vpop.f32.mrb[9].mxu0 }
 0x249   : > { %v796_v31 = vpop.f32.mrb[10].mxu0 }
 0x24a   : > { %v1149_v32 = vpop.f32.mrb[11].mxu0 }
 0x24e   : > { %v726_v33 = vpop.f32.mrb[4].mxu1 }
 0x24f   : > { %v794_v34 = vadd.f32 %v793_v29, %v726_v33  ;;  %v1136_v35 = vpop.f32.mrb[5].mxu1 }
 0x250   : > { %v729_v36 = vpop.f32.mrb[6].mxu1 }
 0x251   : > { %v797_v38 = vadd.f32 %v796_v31, %v729_v36  ;;  %v1137_v39 = vpop.f32.mrb[7].mxu1 }
 0x25e   : > { %v866_v40 = vpop.f32.mrb[8].mxu1 }
 0x25f   : > { %v873_v41 = vadd.f32 %v866_v40, %v794_v34  ;;  %v1160_v42 = vpop.f32.mrb[9].mxu1 }
 0x260   : > { %v869_v43 = vpop.f32.mrb[10].mxu1 }
 0x261   : > { %v882_v44 = vadd.f32 %v1047_v37, %v873_v41  ;;  %v874_v45 = vadd.f32 %v869_v43, %v797_v38  ;;  %v1161_v46 = vpop.f32.mrb[11].mxu1 }
 0x263   : > { %v884_v47 = vadd.f32 %v882_v44, %v1652_v8  ;;  %v883_v48 = vadd.f32 %v1047_v37, %v874_v45 }
 0x265   : > { %v886_v49 = vmax.f32 %v884_v47, 0.0  ;;  %v885_v50 = vadd.f32 %v883_v48, %v1654_v9 }
 0x267   : > { %888 = vst.msk [vmem:[%s271_s28] sm:$0xff] %vm400_vm6, %v886_v49  ;;  %v887_v8 = vmax.f32 %v885_v50, 0.0 }
 0x269   : > { %889 = vst.msk [vmem:[%s271_s28 + $0x8] sm:$0xff] %vm400_vm6, %v887_v8 }
 0x26a   : > { %1363 = shalt.err (!%p1360_p2)
}
 0x26b   : > { %s1364_s6 = scalar_lea.hbm %s1706_s9, 256  ;;  %s1368_s8 = scalar_lea.hbm %s1759_s5, 512 }
 0x26c   : > { %p1365_p13 = scmp.ne.s32.totalorder %s1706_s9, %s1364_s6  ;;  %p1369_p4 = scmp.lt.u32.totalorder %s1706_s9, %s1759_s5 }
 0x26d   : > { %p1370_p5 = scmp.lt.u32.totalorder %s1368_s8, %s1364_s6  ;;  %p1372_p11 = scmp.lt.u32.totalorder %s1364_s6, %s1706_s9 }
 0x26e   : > { %p1366_p6 = pnand %p1365_p13, %p1773_p0 }
 0x26f   : > { %p1371_p8 = por %p1370_p5, %p1369_p4 }
 0x270   : > { %p1367_p10 = pneg %p1366_p6 }
 0x271   : > { %p1373_p1 = por %p1372_p11, %p1371_p8 }
 0x273   : > { %p1374_p3 = pnand %p1373_p1, %p1367_p10 }
 0x275   : > { %1377 = shalt.err (!%p1374_p3)
}
 0x276   : > { %s1433_s28 = smov 128   ;;  %s1434_s15 = smov 8  }
 0x277   : > { %1172 = dma.vmem_to_hbm [thread:$0]  (%p1773_p0), %s1708_s30, 256, %s1706_s9, %s891_s22, %s1433_s28, %s1433_s28, %s1434_s15  }
 0x278 PF: > { %s919_s16 = sand.u32 1, %s1408_s18   ;;  %p1774_p7 = scmp.ne.s32.totalorder %s1764_s25, 0 }
 0x279   : > { %p1775_p9 = scmp.ge.s32.totalorder %s1420_s21, 2  ;;  %s920_s12 = scalar_lea.sflag [#allocation5], %s919_s16 }
 0x27b   : > { %p1186_p12 = pnand %p1775_p9, %p1774_p7 }
 0x27d   : > { %1403 = dma.done.wait (!%p1186_p12), %s920_s12, 256  }
 0x27e   : > { %1405 = vsyncadd (!%p1186_p12), %s920_s12, 4294967040  ;;  %p19_p2 = scmp.ge.s32.totalorder %s1575_s14, 4   ;;  %s1776_s18 = smov %s1412_s19 }
 0x27f   : > { %s1777_s19 = smov %s1416_s20  ;;  %s1778_s20 = smov %s1591_s27 }
 0x280   : > { %s1779_s21 = smov %s1575_s14  ;;  %21 = sbr.rel (!%p19_p2) target bundleno = 6 (0x6), region = 93 }
 0x287   :  { %925 = vsyncpa [#allocation4], 1 }
 0x288   :  { %927 = vsyncpa [#allocation4 + $0x1], 1 }
 0x289   :  { %928 = vsyncpa [#allocation7], 1 }
 0x28a   :  { %929 = vsyncpa [#allocation5], 1 }
 0x28b   :  { %931 = vsyncpa [#allocation5 + $0x1], 1 }

</bundles_post_ra>
